<compile_context>
chip_gen: v7x
topology: tpu7x:2x2x1
jax: 0.10.0
libtpu: 0.0.40
codegen_flags: <defaults>
</compile_context>

<pallas_src>
import functools
import math

import jax
import jax.numpy as jnp
from jax.experimental import pallas as pl
from jax.experimental.pallas import tpu as pltpu

NUM_CLASSES = 100
CLS_PAD = 128   # lane-dense padded classifier width


# ----------------------------------------------------------------------------
# The single fused kernel.
# Layout convention: channels live on sublanes, pixels (b*H*W-ordered) on
# lanes, so every tensor's minor dim is a multiple of 128 (lane dense).
# ----------------------------------------------------------------------------
def _adapcb_fused_kernel(x_ref, w_enc_ref, b_enc_ref, act_ref, e_sq_ref,
                         w_fold_ref, b_cls_ref, z_e_ref, logits_ref,
                         *, batch, levels, num_active):
    w_enc = w_enc_ref[...]                      # (d, C)
    b_enc = b_enc_ref[...]                      # (d, 1)

    # --- encoder: pointwise conv + ReLU6, per batch (channels on sublanes) ---
    z_list = []
    for b in range(batch):                      # static unroll (batch = 2)
        zb = jnp.dot(w_enc, x_ref[b],
                     preferred_element_type=jnp.float32) + b_enc   # (d, HW)
        z_list.append(jnp.clip(zb, 0.0, 6.0))

    # --- normalize: subtract the global mean of the whole (B, d, HW) tensor ---
    total = z_list[0].sum()
    for zb in z_list[1:]:
        total = total + zb.sum()
    nelem = batch * z_list[0].shape[0] * z_list[0].shape[1]
    mean = total / nelem

    actives = act_ref[...]                      # (A, d)
    e_sq = e_sq_ref[...]                        # (A, 1)

    # --- adaptive VQ: running prefix argmin over codeword rows ---------------
    idx_rows = [[None] * batch for _ in range(levels)]
    for b in range(batch):
        z_e_b = z_list[b] - mean                # (d, HW)
        z_e_ref[b, :, :] = z_e_b.astype(z_e_ref.dtype)   # lane-dense store

        # ||z-e||^2 = ||z||^2 + ||e||^2 - 2 z.e ; the per-pixel ||z||^2 term is
        # constant across codewords, so the argmin only needs e_sq - 2*cross.
        cross = jnp.dot(actives, z_e_b,
                        preferred_element_type=jnp.float32)        # (A, HW)
        dist = e_sq - 2.0 * cross                                  # (A, HW)

        # level 0: codewords {0, 1}; first-occurrence tie-break (torch.argmin)
        min_d = jnp.minimum(dist[0:1], dist[1:2])
        idx = jnp.where(dist[0:1] <= dist[1:2], 0, 1).astype(jnp.int32)
        idx_rows[0][b] = idx
        # level k merges only codewords [2^k, 2^(k+1)) into (min_d, idx)
        for k in range(1, levels):
            for a in range(2 ** k, 2 ** (k + 1)):
                d_a = dist[a:a + 1]
                idx = jnp.where(d_a < min_d, a, idx)
                min_d = jnp.minimum(min_d, d_a)
            idx_rows[k][b] = idx

    # --- decode + classify: one folded matmul for all levels -----------------
    # rows ordered level-major / batch-minor so logits[l*B + b] = preds_l[b]
    idx_all = jnp.concatenate(
        [idx_rows[l][b] for l in range(levels) for b in range(batch)], axis=0)
    # one-hot over codewords; column order (a-major, hw-minor) matches w_folded
    onehot = jnp.concatenate(
        [(idx_all == a).astype(jnp.float32) for a in range(num_active)],
        axis=1).astype(jnp.bfloat16)            # (levels*B, A*HW), exact 0/1
    logits = jnp.dot(onehot, w_fold_ref[...],
                     preferred_element_type=jnp.float32) + b_cls_ref[...]
    logits_ref[...] = logits.astype(logits_ref.dtype)


def adapcb_fused_call(x3, w_enc_t, b_enc, actives, e_sq, w_folded, b_cls_pad,
                      *, levels):
    batch, _, hw = x3.shape
    d = w_enc_t.shape[0]
    num_active = actives.shape[0]
    vmem = pl.BlockSpec(memory_space=pltpu.MemorySpace.VMEM)
    # Whole-array single block: total VMEM footprint ~0.6 MiB (folded bf16
    # classifier weight dominates), far under every generation's limit.
    # TODO(synk): for large B*H*W add a pixel grid axis (parallel -> shards
    # across the two v7x TensorCores) plus a separate mean pass, and K-tile the
    # folded classifier matmul with a VMEM accumulator + vmem_limit_bytes.
    return pl.pallas_call(
        functools.partial(_adapcb_fused_kernel, batch=batch, levels=levels,
                          num_active=num_active),
        out_shape=(jax.ShapeDtypeStruct((batch, d, hw), jnp.float32),
                   jax.ShapeDtypeStruct((levels * batch, CLS_PAD), jnp.float32)),
        in_specs=[vmem] * 7,
        out_specs=(vmem, vmem),
    )(x3, w_enc_t, b_enc, actives, e_sq, w_folded, b_cls_pad)


# ----------------------------------------------------------------------------
# Parameter construction (one-time folds/transposes) + forward glue.
# ----------------------------------------------------------------------------
def init_params(key, c_in, num_embeddings, codebook_size, c_dec, h, w,
                num_active):
    k1, k2, k3, k4 = jax.random.split(key, 4)
    p = codebook_size
    d = num_embeddings
    hw = h * w

    # encoder pointwise conv (c_in -> d); stored pre-transposed (d, c_in)
    w_enc = 0.3 * jax.random.normal(k1, (c_in, d), jnp.float32)
    # codebook: uniform(-1/p, 1/p) like nn.Embedding init in the module
    codebook = jax.random.uniform(k2, (p, d), jnp.float32,
                                  minval=-1.0 / p, maxval=1.0 / p)
    # decoder pointwise conv (d -> c_dec)
    w_dec = 0.3 * jax.random.normal(k3, (d, c_dec), jnp.float32)
    b_dec = jnp.zeros((c_dec,), jnp.float32)
    # classifier Linear(c_dec*h*w -> NUM_CLASSES), NCHW-flatten row order
    w_cls = 0.05 * jax.random.normal(k4, (c_dec * hw, NUM_CLASSES), jnp.float32)
    b_cls = jnp.zeros((NUM_CLASSES,), jnp.float32)

    # Fold codebook -> decoder -> classifier (exact: ReLU6 acts per codeword
    # row, before the selection and the linear classifier).  One-time init
    # cost; stored bf16 to halve the dominant HBM weight stream.
    decoded_table = jnp.clip(codebook[:num_active] @ w_dec + b_dec, 0.0, 6.0)
    w_cls_3d = w_cls.reshape(c_dec, hw, NUM_CLASSES)          # rows j = c*hw+hw_i
    w_folded = jnp.einsum("ac,chn->ahn", decoded_table,
                          w_cls_3d).reshape(num_active * hw, NUM_CLASSES)
    w_folded_pad = jnp.pad(
        w_folded, ((0, 0), (0, CLS_PAD - NUM_CLASSES))).astype(jnp.bfloat16)
    b_cls_pad = jnp.pad(b_cls, (0, CLS_PAD - NUM_CLASSES)).reshape(1, CLS_PAD)

    # TODO(synk): serving several num_active settings needs one folded weight
    # per setting (or a full-p fold consumed as a row prefix); this folds for
    # the single static num_active used at inference time.
    return {
        "w_enc_t": jnp.asarray(w_enc.T),          # (d, c_in)
        "b_enc": jnp.zeros((d, 1), jnp.float32),  # (d, 1)
        "codebook": codebook,                     # (p, d)
        "w_dec": w_dec, "b_dec": b_dec,           # kept for reference; folded
        "w_folded": w_folded_pad,                 # (num_active*hw, 128) bf16
        "b_cls_pad": b_cls_pad,                   # (1, 128) f32
    }


@functools.partial(jax.jit, static_argnames=("num_active",))
def adapcb_forward(params, x_nchw, num_active):
    """Eval-mode AdapCB_Model.forward -> (preds_list, vq_loss, actives, z_e)."""
    B, C, H, W = x_nchw.shape
    hw = H * W
    levels = int(math.log2(num_active))

    # kernel consumes NCHW directly (channels on sublanes, pixels on lanes)
    x3 = x_nchw.reshape(B, C, hw)

    actives = params["codebook"][:num_active]                  # (A, d)
    e_sq = jnp.sum(actives * actives, axis=1, keepdims=True)   # (A, 1)

    # folded decoder/classifier weight must have been built for this num_active
    assert params["w_folded"].shape[0] == num_active * hw

    z_e3, logits_pad = adapcb_fused_call(
        x3, params["w_enc_t"], params["b_enc"], actives, e_sq,
        params["w_folded"], params["b_cls_pad"], levels=levels)

    z_e_nchw = z_e3.reshape(B, -1, H, W)          # pure reshape, already NCHW
    logits = logits_pad[:, :NUM_CLASSES]
    preds_list = [logits[l * B:(l + 1) * B] for l in range(levels)]
    vq_loss = [jnp.float32(0.0)] * levels          # eval mode: cb_loss = 0
    return preds_list, vq_loss, actives, z_e_nchw


def _reference_z_e(params, x_nchw):
    """Pure-JAX reference for the encoder + normalize path (sanity check)."""
    z = jnp.einsum("dc,bchw->bdhw", params["w_enc_t"], x_nchw)
    z = jnp.clip(z + params["b_enc"].reshape(1, -1, 1, 1), 0.0, 6.0)
    return z - jnp.mean(z)


if __name__ == "__main__":
    # small shapes consistent with the forward pass
    B, C, H, W = 2, 4, 16, 16          # input image (NCHW)
    NUM_EMBEDDINGS = 8                 # d: channel dim of z_e == codebook dim
    CODEBOOK_SIZE = 16                 # p
    C_DEC = 8                          # decoder output channels
    NUM_ACTIVE = 8                     # -> 3 adaptive levels (2, 4, 8 codewords)

    key = jax.random.PRNGKey(0)
    k_in, k_params = jax.random.split(key)
    x = jax.random.normal(k_in, (B, C, H, W), jnp.float32)
    params = init_params(k_params, C, NUM_EMBEDDINGS, CODEBOOK_SIZE, C_DEC,
                         H, W, NUM_ACTIVE)

    preds_list, vq_loss, actives, z_e = adapcb_forward(params, x, NUM_ACTIVE)

    for p_ in preds_list:
        jax.block_until_ready(p_)
    jax.block_until_ready(z_e)
    jax.block_until_ready(actives)

    levels = int(math.log2(NUM_ACTIVE))
    assert len(preds_list) == levels
    assert all(p_.shape == (B, NUM_CLASSES) for p_ in preds_list)
    assert all(bool(jnp.isfinite(p_).all()) for p_ in preds_list)
    assert z_e.shape == (B, NUM_EMBEDDINGS, H, W)
    assert actives.shape == (NUM_ACTIVE, NUM_EMBEDDINGS)

    # numeric sanity: kernel's encoder+normalize matches a pure-JAX reference
    z_e_ref = _reference_z_e(params, x)
    assert bool(jnp.allclose(z_e, z_e_ref, atol=1e-4, rtol=1e-4))

    print("KERNEL_OK")
</pallas_src>

<mosaic_0001>
module attributes {stable_mosaic.version = 11 : i64} {
  func.func @_adapcb_fused_kernel(%arg0: memref<2x4x256xf32, #tpu.memory_space<vmem>>, %arg1: memref<8x4xf32, #tpu.memory_space<vmem>>, %arg2: memref<8x1xf32, #tpu.memory_space<vmem>>, %arg3: memref<8x8xf32, #tpu.memory_space<vmem>>, %arg4: memref<8x1xf32, #tpu.memory_space<vmem>>, %arg5: memref<2048x128xbf16, #tpu.memory_space<vmem>>, %arg6: memref<1x128xf32, #tpu.memory_space<vmem>>, %arg7: memref<2x8x256xf32, #tpu.memory_space<vmem>>, %arg8: memref<6x128xf32, #tpu.memory_space<vmem>>) attributes {dimension_semantics = [], scalar_prefetch = 0 : i64, scratch_operands = 0 : i64, tpu.core_type = #tpu.core_type<tc>} {
    %c0 = arith.constant 0 : index
    %c0_0 = arith.constant 0 : index
    %0 = vector.load %arg1[%c0, %c0_0] : memref<8x4xf32, #tpu.memory_space<vmem>>, vector<8x4xf32>
    %c0_1 = arith.constant 0 : index
    %c0_2 = arith.constant 0 : index
    %1 = vector.load %arg2[%c0_1, %c0_2] : memref<8x1xf32, #tpu.memory_space<vmem>>, vector<8x1xf32>
    %c0_3 = arith.constant 0 : index
    %c0_4 = arith.constant 0 : index
    %c0_5 = arith.constant 0 : index
    %2 = vector.load %arg0[%c0_3, %c0_4, %c0_5] : memref<2x4x256xf32, #tpu.memory_space<vmem>>, vector<1x4x256xf32>
    %3 = vector.shape_cast %2 : vector<1x4x256xf32> to vector<4x256xf32>
    %cst = arith.constant dense<0.000000e+00> : vector<8x256xf32>
    %4 = tpu.matmul %0, %3, %cst {dimension_numbers = #tpu.dot_dimension_numbers<[1], [0], [0], [1], [0, 0, 1, 1], [], []>} : vector<8x4xf32>, vector<4x256xf32>, vector<8x256xf32> -> vector<8x256xf32>
    %5 = vector.broadcast %1 : vector<8x1xf32> to vector<8x256xf32>
    %6 = arith.addf %4, %5 : vector<8x256xf32>
    %cst_6 = arith.constant 0.000000e+00 : f32
    %cst_7 = arith.constant 6.000000e+00 : f32
    %7 = vector.broadcast %cst_6 : f32 to vector<8x256xf32>
    %8 = arith.maximumf %7, %6 : vector<8x256xf32>
    %9 = vector.broadcast %cst_7 : f32 to vector<8x256xf32>
    %10 = arith.minimumf %9, %8 : vector<8x256xf32>
    %c1 = arith.constant 1 : index
    %c0_8 = arith.constant 0 : index
    %c0_9 = arith.constant 0 : index
    %11 = vector.load %arg0[%c1, %c0_8, %c0_9] : memref<2x4x256xf32, #tpu.memory_space<vmem>>, vector<1x4x256xf32>
    %12 = vector.shape_cast %11 : vector<1x4x256xf32> to vector<4x256xf32>
    %cst_10 = arith.constant dense<0.000000e+00> : vector<8x256xf32>
    %13 = tpu.matmul %0, %12, %cst_10 {dimension_numbers = #tpu.dot_dimension_numbers<[1], [0], [0], [1], [0, 0, 1, 1], [], []>} : vector<8x4xf32>, vector<4x256xf32>, vector<8x256xf32> -> vector<8x256xf32>
    %14 = vector.broadcast %1 : vector<8x1xf32> to vector<8x256xf32>
    %15 = arith.addf %13, %14 : vector<8x256xf32>
    %cst_11 = arith.constant 0.000000e+00 : f32
    %cst_12 = arith.constant 6.000000e+00 : f32
    %16 = vector.broadcast %cst_11 : f32 to vector<8x256xf32>
    %17 = arith.maximumf %16, %15 : vector<8x256xf32>
    %18 = vector.broadcast %cst_12 : f32 to vector<8x256xf32>
    %19 = arith.minimumf %18, %17 : vector<8x256xf32>
    %20 = vector.shape_cast %10 : vector<8x256xf32> to vector<1x8x256xf32>
    %cst_13 = arith.constant dense<0.000000e+00> : vector<1xf32>
    %21 = vector.multi_reduction <add>, %20, %cst_13 [1, 2] : vector<1x8x256xf32> to vector<1xf32>
    %22 = vector.shape_cast %21 : vector<1xf32> to vector<1x1x1xf32>
    %23 = vector.extract %22[0, 0, 0] : f32 from vector<1x1x1xf32>
    %24 = vector.shape_cast %19 : vector<8x256xf32> to vector<1x8x256xf32>
    %cst_14 = arith.constant dense<0.000000e+00> : vector<1xf32>
    %25 = vector.multi_reduction <add>, %24, %cst_14 [1, 2] : vector<1x8x256xf32> to vector<1xf32>
    %26 = vector.shape_cast %25 : vector<1xf32> to vector<1x1x1xf32>
    %27 = vector.extract %26[0, 0, 0] : f32 from vector<1x1x1xf32>
    %28 = arith.addf %23, %27 : f32
    %cst_15 = arith.constant 4.096000e+03 : f32
    %29 = arith.divf %28, %cst_15 : f32
    %c0_16 = arith.constant 0 : index
    %c0_17 = arith.constant 0 : index
    %30 = vector.load %arg3[%c0_16, %c0_17] : memref<8x8xf32, #tpu.memory_space<vmem>>, vector<8x8xf32>
    %c0_18 = arith.constant 0 : index
    %c0_19 = arith.constant 0 : index
    %31 = vector.load %arg4[%c0_18, %c0_19] : memref<8x1xf32, #tpu.memory_space<vmem>>, vector<8x1xf32>
    %32 = vector.broadcast %29 : f32 to vector<8x256xf32>
    %33 = arith.subf %10, %32 : vector<8x256xf32>
    %c0_20 = arith.constant 0 : index
    %c0_21 = arith.constant 0 : index
    %c0_22 = arith.constant 0 : index
    %34 = vector.load %arg7[%c0_20, %c0_21, %c0_22] : memref<2x8x256xf32, #tpu.memory_space<vmem>>, vector<1x8x256xf32>
    %35 = vector.shape_cast %34 : vector<1x8x256xf32> to vector<8x256xf32>
    %36 = vector.shape_cast %33 : vector<8x256xf32> to vector<1x8x256xf32>
    tpu.vector_store %arg7[%c0_20, %c0_21, %c0_22], %36 {strides = array<i32>} : memref<2x8x256xf32, #tpu.memory_space<vmem>>, vector<1x8x256xf32>,
    %cst_23 = arith.constant dense<0.000000e+00> : vector<8x256xf32>
    %37 = tpu.matmul %30, %33, %cst_23 {dimension_numbers = #tpu.dot_dimension_numbers<[1], [0], [0], [1], [0, 0, 1, 1], [], []>} : vector<8x8xf32>, vector<8x256xf32>, vector<8x256xf32> -> vector<8x256xf32>
    %cst_24 = arith.constant 2.000000e+00 : f32
    %38 = vector.broadcast %cst_24 : f32 to vector<8x256xf32>
    %39 = arith.mulf %38, %37 : vector<8x256xf32>
    %40 = vector.broadcast %31 : vector<8x1xf32> to vector<8x256xf32>
    %41 = arith.subf %40, %39 : vector<8x256xf32>
    %42 = vector.extract_strided_slice %41 {offsets = [0, 0], sizes = [1, 256], strides = [1, 1]} : vector<8x256xf32> to vector<1x256xf32>
    %43 = vector.extract_strided_slice %41 {offsets = [1, 0], sizes = [1, 256], strides = [1, 1]} : vector<8x256xf32> to vector<1x256xf32>
    %44 = arith.minimumf %42, %43 : vector<1x256xf32>
    %45 = vector.extract_strided_slice %41 {offsets = [0, 0], sizes = [1, 256], strides = [1, 1]} : vector<8x256xf32> to vector<1x256xf32>
    %46 = vector.extract_strided_slice %41 {offsets = [1, 0], sizes = [1, 256], strides = [1, 1]} : vector<8x256xf32> to vector<1x256xf32>
    %47 = arith.cmpf ole, %45, %46 : vector<1x256xf32>
    %c0_i32 = arith.constant 0 : i32
    %c1_i32 = arith.constant 1 : i32
    %48 = vector.broadcast %c0_i32 : i32 to vector<1x256xi32>
    %49 = vector.broadcast %c1_i32 : i32 to vector<1x256xi32>
    %50 = arith.select %47, %48, %49 : vector<1x256xi1>, vector<1x256xi32>
    %51 = vector.extract_strided_slice %41 {offsets = [2, 0], sizes = [1, 256], strides = [1, 1]} : vector<8x256xf32> to vector<1x256xf32>
    %52 = arith.cmpf olt, %51, %44 : vector<1x256xf32>
    %c2_i32 = arith.constant 2 : i32
    %53 = vector.broadcast %c2_i32 : i32 to vector<1x256xi32>
    %54 = arith.select %52, %53, %50 : vector<1x256xi1>, vector<1x256xi32>
    %55 = arith.minimumf %44, %51 : vector<1x256xf32>
    %56 = vector.extract_strided_slice %41 {offsets = [3, 0], sizes = [1, 256], strides = [1, 1]} : vector<8x256xf32> to vector<1x256xf32>
    %57 = arith.cmpf olt, %56, %55 : vector<1x256xf32>
    %c3_i32 = arith.constant 3 : i32
    %58 = vector.broadcast %c3_i32 : i32 to vector<1x256xi32>
    %59 = arith.select %57, %58, %54 : vector<1x256xi1>, vector<1x256xi32>
    %60 = arith.minimumf %55, %56 : vector<1x256xf32>
    %61 = vector.extract_strided_slice %41 {offsets = [4, 0], sizes = [1, 256], strides = [1, 1]} : vector<8x256xf32> to vector<1x256xf32>
    %62 = arith.cmpf olt, %61, %60 : vector<1x256xf32>
    %c4_i32 = arith.constant 4 : i32
    %63 = vector.broadcast %c4_i32 : i32 to vector<1x256xi32>
    %64 = arith.select %62, %63, %59 : vector<1x256xi1>, vector<1x256xi32>
    %65 = arith.minimumf %60, %61 : vector<1x256xf32>
    %66 = vector.extract_strided_slice %41 {offsets = [5, 0], sizes = [1, 256], strides = [1, 1]} : vector<8x256xf32> to vector<1x256xf32>
    %67 = arith.cmpf olt, %66, %65 : vector<1x256xf32>
    %c5_i32 = arith.constant 5 : i32
    %68 = vector.broadcast %c5_i32 : i32 to vector<1x256xi32>
    %69 = arith.select %67, %68, %64 : vector<1x256xi1>, vector<1x256xi32>
    %70 = arith.minimumf %65, %66 : vector<1x256xf32>
    %71 = vector.extract_strided_slice %41 {offsets = [6, 0], sizes = [1, 256], strides = [1, 1]} : vector<8x256xf32> to vector<1x256xf32>
    %72 = arith.cmpf olt, %71, %70 : vector<1x256xf32>
    %c6_i32 = arith.constant 6 : i32
    %73 = vector.broadcast %c6_i32 : i32 to vector<1x256xi32>
    %74 = arith.select %72, %73, %69 : vector<1x256xi1>, vector<1x256xi32>
    %75 = arith.minimumf %70, %71 : vector<1x256xf32>
    %76 = vector.extract_strided_slice %41 {offsets = [7, 0], sizes = [1, 256], strides = [1, 1]} : vector<8x256xf32> to vector<1x256xf32>
    %77 = arith.cmpf olt, %76, %75 : vector<1x256xf32>
    %c7_i32 = arith.constant 7 : i32
    %78 = vector.broadcast %c7_i32 : i32 to vector<1x256xi32>
    %79 = arith.select %77, %78, %74 : vector<1x256xi1>, vector<1x256xi32>
    %80 = vector.broadcast %29 : f32 to vector<8x256xf32>
    %81 = arith.subf %19, %80 : vector<8x256xf32>
    %c1_25 = arith.constant 1 : index
    %c0_26 = arith.constant 0 : index
    %c0_27 = arith.constant 0 : index
    %82 = vector.load %arg7[%c1_25, %c0_26, %c0_27] : memref<2x8x256xf32, #tpu.memory_space<vmem>>, vector<1x8x256xf32>
    %83 = vector.shape_cast %82 : vector<1x8x256xf32> to vector<8x256xf32>
    %84 = vector.shape_cast %81 : vector<8x256xf32> to vector<1x8x256xf32>
    tpu.vector_store %arg7[%c1_25, %c0_26, %c0_27], %84 {strides = array<i32>} : memref<2x8x256xf32, #tpu.memory_space<vmem>>, vector<1x8x256xf32>,
    %cst_28 = arith.constant dense<0.000000e+00> : vector<8x256xf32>
    %85 = tpu.matmul %30, %81, %cst_28 {dimension_numbers = #tpu.dot_dimension_numbers<[1], [0], [0], [1], [0, 0, 1, 1], [], []>} : vector<8x8xf32>, vector<8x256xf32>, vector<8x256xf32> -> vector<8x256xf32>
    %cst_29 = arith.constant 2.000000e+00 : f32
    %86 = vector.broadcast %cst_29 : f32 to vector<8x256xf32>
    %87 = arith.mulf %86, %85 : vector<8x256xf32>
    %88 = vector.broadcast %31 : vector<8x1xf32> to vector<8x256xf32>
    %89 = arith.subf %88, %87 : vector<8x256xf32>
    %90 = vector.extract_strided_slice %89 {offsets = [0, 0], sizes = [1, 256], strides = [1, 1]} : vector<8x256xf32> to vector<1x256xf32>
    %91 = vector.extract_strided_slice %89 {offsets = [1, 0], sizes = [1, 256], strides = [1, 1]} : vector<8x256xf32> to vector<1x256xf32>
    %92 = arith.minimumf %90, %91 : vector<1x256xf32>
    %93 = vector.extract_strided_slice %89 {offsets = [0, 0], sizes = [1, 256], strides = [1, 1]} : vector<8x256xf32> to vector<1x256xf32>
    %94 = vector.extract_strided_slice %89 {offsets = [1, 0], sizes = [1, 256], strides = [1, 1]} : vector<8x256xf32> to vector<1x256xf32>
    %95 = arith.cmpf ole, %93, %94 : vector<1x256xf32>
    %c0_i32_30 = arith.constant 0 : i32
    %c1_i32_31 = arith.constant 1 : i32
    %96 = vector.broadcast %c0_i32_30 : i32 to vector<1x256xi32>
    %97 = vector.broadcast %c1_i32_31 : i32 to vector<1x256xi32>
    %98 = arith.select %95, %96, %97 : vector<1x256xi1>, vector<1x256xi32>
    %99 = vector.extract_strided_slice %89 {offsets = [2, 0], sizes = [1, 256], strides = [1, 1]} : vector<8x256xf32> to vector<1x256xf32>
    %100 = arith.cmpf olt, %99, %92 : vector<1x256xf32>
    %c2_i32_32 = arith.constant 2 : i32
    %101 = vector.broadcast %c2_i32_32 : i32 to vector<1x256xi32>
    %102 = arith.select %100, %101, %98 : vector<1x256xi1>, vector<1x256xi32>
    %103 = arith.minimumf %92, %99 : vector<1x256xf32>
    %104 = vector.extract_strided_slice %89 {offsets = [3, 0], sizes = [1, 256], strides = [1, 1]} : vector<8x256xf32> to vector<1x256xf32>
    %105 = arith.cmpf olt, %104, %103 : vector<1x256xf32>
    %c3_i32_33 = arith.constant 3 : i32
    %106 = vector.broadcast %c3_i32_33 : i32 to vector<1x256xi32>
    %107 = arith.select %105, %106, %102 : vector<1x256xi1>, vector<1x256xi32>
    %108 = arith.minimumf %103, %104 : vector<1x256xf32>
    %109 = vector.extract_strided_slice %89 {offsets = [4, 0], sizes = [1, 256], strides = [1, 1]} : vector<8x256xf32> to vector<1x256xf32>
    %110 = arith.cmpf olt, %109, %108 : vector<1x256xf32>
    %c4_i32_34 = arith.constant 4 : i32
    %111 = vector.broadcast %c4_i32_34 : i32 to vector<1x256xi32>
    %112 = arith.select %110, %111, %107 : vector<1x256xi1>, vector<1x256xi32>
    %113 = arith.minimumf %108, %109 : vector<1x256xf32>
    %114 = vector.extract_strided_slice %89 {offsets = [5, 0], sizes = [1, 256], strides = [1, 1]} : vector<8x256xf32> to vector<1x256xf32>
    %115 = arith.cmpf olt, %114, %113 : vector<1x256xf32>
    %c5_i32_35 = arith.constant 5 : i32
    %116 = vector.broadcast %c5_i32_35 : i32 to vector<1x256xi32>
    %117 = arith.select %115, %116, %112 : vector<1x256xi1>, vector<1x256xi32>
    %118 = arith.minimumf %113, %114 : vector<1x256xf32>
    %119 = vector.extract_strided_slice %89 {offsets = [6, 0], sizes = [1, 256], strides = [1, 1]} : vector<8x256xf32> to vector<1x256xf32>
    %120 = arith.cmpf olt, %119, %118 : vector<1x256xf32>
    %c6_i32_36 = arith.constant 6 : i32
    %121 = vector.broadcast %c6_i32_36 : i32 to vector<1x256xi32>
    %122 = arith.select %120, %121, %117 : vector<1x256xi1>, vector<1x256xi32>
    %123 = arith.minimumf %118, %119 : vector<1x256xf32>
    %124 = vector.extract_strided_slice %89 {offsets = [7, 0], sizes = [1, 256], strides = [1, 1]} : vector<8x256xf32> to vector<1x256xf32>
    %125 = arith.cmpf olt, %124, %123 : vector<1x256xf32>
    %c7_i32_37 = arith.constant 7 : i32
    %126 = vector.broadcast %c7_i32_37 : i32 to vector<1x256xi32>
    %127 = arith.select %125, %126, %122 : vector<1x256xi1>, vector<1x256xi32>
    %128 = tpu.concatenate %50, %98, %59, %107, %79, %127 in 0 : vector<1x256xi32>, vector<1x256xi32>, vector<1x256xi32>, vector<1x256xi32>, vector<1x256xi32>, vector<1x256xi32> -> vector<6x256xi32>
    %c0_i32_38 = arith.constant 0 : i32
    %129 = vector.broadcast %c0_i32_38 : i32 to vector<6x256xi32>
    %130 = arith.cmpi eq, %128, %129 : vector<6x256xi32>
    %131 = arith.extui %130 : vector<6x256xi1> to vector<6x256xi32>
    %132 = arith.sitofp %131 : vector<6x256xi32> to vector<6x256xf32>
    %c1_i32_39 = arith.constant 1 : i32
    %133 = vector.broadcast %c1_i32_39 : i32 to vector<6x256xi32>
    %134 = arith.cmpi eq, %128, %133 : vector<6x256xi32>
    %135 = arith.extui %134 : vector<6x256xi1> to vector<6x256xi32>
    %136 = arith.sitofp %135 : vector<6x256xi32> to vector<6x256xf32>
    %c2_i32_40 = arith.constant 2 : i32
    %137 = vector.broadcast %c2_i32_40 : i32 to vector<6x256xi32>
    %138 = arith.cmpi eq, %128, %137 : vector<6x256xi32>
    %139 = arith.extui %138 : vector<6x256xi1> to vector<6x256xi32>
    %140 = arith.sitofp %139 : vector<6x256xi32> to vector<6x256xf32>
    %c3_i32_41 = arith.constant 3 : i32
    %141 = vector.broadcast %c3_i32_41 : i32 to vector<6x256xi32>
    %142 = arith.cmpi eq, %128, %141 : vector<6x256xi32>
    %143 = arith.extui %142 : vector<6x256xi1> to vector<6x256xi32>
    %144 = arith.sitofp %143 : vector<6x256xi32> to vector<6x256xf32>
    %c4_i32_42 = arith.constant 4 : i32
    %145 = vector.broadcast %c4_i32_42 : i32 to vector<6x256xi32>
    %146 = arith.cmpi eq, %128, %145 : vector<6x256xi32>
    %147 = arith.extui %146 : vector<6x256xi1> to vector<6x256xi32>
    %148 = arith.sitofp %147 : vector<6x256xi32> to vector<6x256xf32>
    %c5_i32_43 = arith.constant 5 : i32
    %149 = vector.broadcast %c5_i32_43 : i32 to vector<6x256xi32>
    %150 = arith.cmpi eq, %128, %149 : vector<6x256xi32>
    %151 = arith.extui %150 : vector<6x256xi1> to vector<6x256xi32>
    %152 = arith.sitofp %151 : vector<6x256xi32> to vector<6x256xf32>
    %c6_i32_44 = arith.constant 6 : i32
    %153 = vector.broadcast %c6_i32_44 : i32 to vector<6x256xi32>
    %154 = arith.cmpi eq, %128, %153 : vector<6x256xi32>
    %155 = arith.extui %154 : vector<6x256xi1> to vector<6x256xi32>
    %156 = arith.sitofp %155 : vector<6x256xi32> to vector<6x256xf32>
    %c7_i32_45 = arith.constant 7 : i32
    %157 = vector.broadcast %c7_i32_45 : i32 to vector<6x256xi32>
    %158 = arith.cmpi eq, %128, %157 : vector<6x256xi32>
    %159 = arith.extui %158 : vector<6x256xi1> to vector<6x256xi32>
    %160 = arith.sitofp %159 : vector<6x256xi32> to vector<6x256xf32>
    %161 = tpu.concatenate %132, %136, %140, %144, %148, %152, %156, %160 in 1 : vector<6x256xf32>, vector<6x256xf32>, vector<6x256xf32>, vector<6x256xf32>, vector<6x256xf32>, vector<6x256xf32>, vector<6x256xf32>, vector<6x256xf32> -> vector<6x2048xf32>
    %162 = arith.truncf %161 : vector<6x2048xf32> to vector<6x2048xbf16>
    %c0_46 = arith.constant 0 : index
    %c0_47 = arith.constant 0 : index
    %163 = vector.load %arg5[%c0_46, %c0_47] : memref<2048x128xbf16, #tpu.memory_space<vmem>>, vector<2048x128xbf16>
    %cst_48 = arith.constant dense<0.000000e+00> : vector<6x128xf32>
    %164 = tpu.matmul %162, %163, %cst_48 {dimension_numbers = #tpu.dot_dimension_numbers<[1], [0], [0], [1], [0, 0, 1, 1], [], []>} : vector<6x2048xbf16>, vector<2048x128xbf16>, vector<6x128xf32> -> vector<6x128xf32>
    %c0_49 = arith.constant 0 : index
    %c0_50 = arith.constant 0 : index
    %165 = vector.load %arg6[%c0_49, %c0_50] : memref<1x128xf32, #tpu.memory_space<vmem>>, vector<1x128xf32>
    %166 = vector.broadcast %165 : vector<1x128xf32> to vector<6x128xf32>
    %167 = arith.addf %164, %166 : vector<6x128xf32>
    %c0_51 = arith.constant 0 : index
    %c0_52 = arith.constant 0 : index
    %168 = vector.load %arg8[%c0_51, %c0_52] : memref<6x128xf32, #tpu.memory_space<vmem>>, vector<6x128xf32>
    tpu.vector_store %arg8[%c0_51, %c0_52], %167 {strides = array<i32>} : memref<6x128xf32, #tpu.memory_space<vmem>>, vector<6x128xf32>,
    return
  }
}

</mosaic_0001>

<bundles_post_ra>
// kernel: adapcb_forward.1
= control target key start
LH: loop header
LB: loop body
LE: loop exit
PB: predicated region body
PF: predicated region fallthrough
CT: control target
= control target key end

     0   :  { %14 = vsyncpa [#allocation3], 0  ;;  %s2621_s27 = smov [#allocation2]   ;;  %s2877_s0 = inlined_call_operand.vmem [shape: f32[2,4,256], index: 0, kind: input, shape index: {}]   ;;  %s2878_s1 = inlined_call_operand.vmem [shape: f32[8,4], index: 1, kind: input, shape index: {}]   ;;  %s2879_s2 = inlined_call_operand.vmem [shape: f32[8,1], index: 2, kind: input, shape index: {}]   ;;  %s2880_s3 = inlined_call_operand.vmem [shape: f32[8,8], index: 3, kind: input, shape index: {}]   ;;  %s2881_s4 = inlined_call_operand.vmem [shape: f32[8,1], index: 4, kind: input, shape index: {}]   ;;  %s2882_s5 = inlined_call_operand.hbm [shape: bf16[2048,128], index: 5, kind: input, shape index: {}]   ;;  %s2883_s6 = inlined_call_operand.vmem [shape: f32[1,128], index: 6, kind: input, shape index: {}]   ;;  %s2884_s7 = inlined_call_operand.vmem [shape: f32[2,8,256], index: 7, kind: output, shape index: {0}]   ;;  %s2885_s8 = inlined_call_operand.vmem [shape: f32[6,128], index: 8, kind: output, shape index: {1}]  }
   0x1   :  { %s30_s28 = sshll.u32 %s2621_s27, 4  ;;  %s2597_s9 = scalar_lea.hbm %s2882_s5, 16384  ;;  %s31_s28 = int_to_ptr.vmem [resolvable:$true] %s30_s28 }
   0x2   :  { %p2598_p0 = scmp.ne.s32.totalorder %s2882_s5, %s2597_s9  ;;  %p2601_p1 = scmp.lt.u32.totalorder %s2597_s9, %s2882_s5 }
   0x4   :  { %p2603_p2 = pnand %p2601_p1, %p2598_p0 }
   0x6   :  { %2606 = shalt.err (!%p2603_p2)
}
   0x7   :  { %s2607_s14 = scalar_lea.vmem %s31_s28, 16384  ;;  %p2612_p4 = scmp.lt.s32.totalorder %s31_s28, %s31_s28 }
   0x8   :  { %p2608_p3 = scmp.ne.s32.totalorder %s31_s28, %s2607_s14  ;;  %p2613_p5 = scmp.lt.s32.totalorder %s2607_s14, %s2607_s14 }
   0xa   :  { %p2614_p6 = por %p2613_p5, %p2612_p4 }
   0xc   :  { %p2615_p7 = pnand %p2614_p6, %p2608_p3 }
   0xe   :  { %2618 = shalt.err (!%p2615_p7)
}
   0xf   :  { %s2622_s15 = smov 64   ;;  %s2623_s16 = smov 4  }
  0x10   :  { %36 = dma.hbm_to_vmem [thread:$0]  %s2882_s5, 16384, %s31_s28, [#allocation3], %s2622_s15, %s2622_s15, %s2623_s16  }
  0x11   :  { %2619 = dma.done.wait [#allocation3], 16384  }
  0x12   :  { %2620 = vsyncadd [#allocation3], 4294950912  ;;  %v2624_v0 = vmov 0.0   ;;  %v2625_v1 = vmov 0   ;;  %v45_v2 = vld [vmem:[%s2877_s0] sm:$0xff]  ;;  %vm57_vm0 = vcmask 1043456  }
  0x13   :  { %126 = vmatprep.mubr.f32.mxu0 %v2624_v0  ;;  %209 = vmatprep.mubr.f32.mxu1 %v2624_v0  ;;  %v2093_v3 = vld [vmem:[%s2877_s0 + $0x8] sm:$0xff]  ;;  %v43_v4 = vld [vmem:[%s2878_s1] sm:$0xff]  ;;  %v52_v5 = vcombine.high %v45_v2, %v45_v2  ;;  %vm53_vm1 = vcmask 31744   ;;  %vm251_vm2 = vcmask 64512   ;;  %v2477_v56 = vld [vmem:[#allocation2 + $0x50] sm:$0xff]   ;;  %vm651_vm5 = vcmask 1040384  }
  0x14   :  { %2465 = vset.pattern.permute.xlu0 %v2625_v1  ;;  %2466 = vset.pattern.permute.xlu1 %v2625_v1  ;;  %v140_v6 = vcombine.high %v2093_v3, %v2093_v3  ;;  %v44_v7 = vld [vmem:[%s2879_s2] sm:$0xff]  ;;  %v2473_v52 = vld [vmem:[#allocation2 + $0x48] sm:$0xff]   ;;  %v2478_v57 = vld [vmem:[#allocation2 + $0xd0] sm:$0xff]   ;;  %vm654_vm6 = vcmask 1041408   ;;  %vm657_vm9 = vcmask 1042432  }
  0x15   :  { %48 = vperm.xlu0 %2465, %v44_v7   ;;  %2090 = vmatprep.subr.msk.mxu0 %vm57_vm0, %v52_v5  ;;  %v245_v27 = vld [vmem:[%s2881_s4] sm:$0xff]  ;;  %v2474_v53 = vld [vmem:[#allocation2 + $0xc8] sm:$0xff]   ;;  %v2479_v58 = vld [vmem:[#allocation2 + $0x10] sm:$0xff]  }
  0x16   :  { %2094 = vmatprep.subr.msk.mxu1 %vm57_vm0, %v140_v6  ;;  %2091 = vmatpush1.msk.msra.mxu0 %vm57_vm0, %v45_v2  ;;  %v244_v47 = vld [vmem:[%s2880_s3] sm:$0xff]  ;;  %v2475_v54 = vld [vmem:[#allocation2 + $0x8] sm:$0xff]   ;;  %v2480_v59 = vld [vmem:[#allocation2 + $0x90] sm:$0xff]  }
  0x17   :  { %2095 = vmatpush1.msk.msra.mxu1 %vm57_vm0, %v2093_v3  ;;  %2092 = vmatmul.mubr.msk.f32.vlgmr.msra.gmra.mrb[0].mxu0 %vm53_vm1, %v43_v4  ;;  %v2469_v48 = vld [vmem:[#allocation2 + $0x40] sm:$0xff]   ;;  %v2476_v55 = vld [vmem:[#allocation2 + $0x88] sm:$0xff]   ;;  %v2481_v60 = vld [vmem:[#allocation2 + $0x58] sm:$0xff]  }
  0x18   :  { %2096 = vmatmul.mubr.msk.f32.vlgmr.msra.gmra.mrb[0].mxu1 %vm53_vm1, %v43_v4  ;;  %319 = vmatprep.mubr.f32.mxu0 %v2624_v0  ;;  %v2470_v49 = vld [vmem:[#allocation2 + $0xc0] sm:$0xff]   ;;  %v2482_v61 = vld [vmem:[#allocation2 + $0xd8] sm:$0xff]   ;;  %v2489_v4 = vld [vmem:[#allocation2 + $0x68] sm:$0xff]  }
  0x19   :  { %518 = vmatprep.mubr.f32.mxu1 %v2624_v0  ;;  %v2471_v50 = vld [vmem:[#allocation2] sm:$0xff]   ;;  %v2483_v62 = vld [vmem:[#allocation2 + $0x18] sm:$0xff]   ;;  %v2490_v5 = vld [vmem:[#allocation2 + $0xe8] sm:$0xff]  }
  0x1a   :  { %v2472_v51 = vld [vmem:[#allocation2 + $0x80] sm:$0xff]   ;;  %v2484_v63 = vld [vmem:[#allocation2 + $0x98] sm:$0xff]   ;;  %v2491_v6 = vld [vmem:[#allocation2 + $0x28] sm:$0xff]  }
  0x1b   :  { %v2485_v0 = vld [vmem:[#allocation2 + $0x60] sm:$0xff]   ;;  %v2492_v7 = vld [vmem:[#allocation2 + $0xa8] sm:$0xff]  }
  0x1c   :  { %v2486_v1 = vld [vmem:[#allocation2 + $0xe0] sm:$0xff]  }
  0x1d   :  { %v2487_v2 = vld [vmem:[#allocation2 + $0x20] sm:$0xff]  }
  0x1e   :  { %v2488_v3 = vld [vmem:[#allocation2 + $0xa0] sm:$0xff]  }
  0x94   :  { %v49_v8 = vpop.permute.xlu0 %48 }
  0xea   :  { %v128_v9 = vpop.f32.mrb[0].mxu0 }
  0xeb   :  { %v211_v10 = vpop.f32.mrb[0].mxu1  ;;  %v129_v11 = vadd.f32 %v128_v9, %v49_v8  ;;  %v130_v13 = vpop.f32.mrb[1].mxu0  ;;  %v2494_v9 = vld [vmem:[#allocation2 + $0xf0] sm:$0xff]  }
  0xec   :  { %v212_v12 = vadd.f32 %v211_v10, %v49_v8  ;;  %v213_v14 = vpop.f32.mrb[1].mxu1  ;;  %v131_v15 = vadd.f32 %v130_v13, %v49_v8  ;;  %v2495_v10 = vld [vmem:[#allocation2 + $0x30] sm:$0xff]   ;;  %v2498_v13 = vld [vmem:[#allocation2 + $0xf8] sm:$0xff]  }
  0xed   :  { %v214_v16 = vadd.f32 %v213_v14, %v49_v8  ;;  %v133_v17 = vmax.f32 %v129_v11, 0.0  ;;  %v2493_v8 = vld [vmem:[#allocation2 + $0x70] sm:$0xff]   ;;  %v2499_v14 = vld [vmem:[#allocation2 + $0x38] sm:$0xff]  }
  0xee   :  { %v216_v18 = vmax.f32 %v212_v12, 0.0  ;;  %v134_v19 = vmax.f32 %v131_v15, 0.0  ;;  %v2496_v11 = vld [vmem:[#allocation2 + $0xb0] sm:$0xff]   ;;  %v2497_v12 = vld [vmem:[#allocation2 + $0x78] sm:$0xff]  }
  0xef   :  { %v217_v20 = vmax.f32 %v214_v16, 0.0  ;;  %v135_v21 = vmin.f32 %v133_v17, 6.0  ;;  %v2500_v15 = vld [vmem:[#allocation2 + $0xb8] sm:$0xff]   ;;  %v2501_v16 = vld [vmem:[#allocation2 + $0x140] sm:$0xff]  }
  0xf0   :  { %v218_v22 = vmin.f32 %v216_v18, 6.0  ;;  %v136_v23 = vmin.f32 %v134_v19, 6.0  ;;  %v2502_v17 = vld [vmem:[#allocation2 + $0x1c0] sm:$0xff]  }
  0xf1   :  { %v219_v24 = vmin.f32 %v217_v20, 6.0 }
  0xf2   :  { %v220_v26 = vadd.f32 %v136_v23, %v135_v21 }
  0xf3   :  { %v230_v25 = vadd.f32 %v219_v24, %v218_v22 }
  0xf4   :  { %221 = vadd.xlane.f32.xlu0 %v220_v26 }
  0xf5   :  { %231 = vadd.xlane.f32.xlu1 %v230_v25 }
 0x106   :  { %330 = vperm.xlu1 %2466, %v245_v27  }
 0x181   :  { %v222_v29 = vpop.xlane.xlu0 %221 }
 0x182   :  { %v232_v28 = vpop.xlane.xlu1 %231  ;;  %v223_v31 = vrot.slane %v222_v29, 4 }
 0x183   :  { %v233_v30 = vrot.slane %v232_v28, 4 }
 0x184   :  { %v224_v33 = vadd.f32 %v223_v31, %v222_v29 }
 0x185   :  { %v234_v32 = vadd.f32 %v233_v30, %v232_v28 }
 0x186   :  { %v225_v35 = vrot.slane %v224_v33, 2  ;;  %v331_v18 = vpop.permute.xlu1 %330 }
 0x187   :  { %v235_v34 = vrot.slane %v234_v32, 2 }
 0x188   :  { %v226_v36 = vadd.f32 %v225_v35, %v224_v33 }
 0x189   :  { %v236_v37 = vadd.f32 %v235_v34, %v234_v32 }
 0x18a   :  { %v227_v38 = vrot.slane %v226_v36, 1 }
 0x18b   :  { %v237_v39 = vrot.slane %v236_v37, 1 }
 0x18c   :  { %v228_v40 = vadd.f32 %v227_v38, %v226_v36 }
 0x18d   :  { %v238_v41 = vadd.f32 %v237_v39, %v236_v37 }
 0x18e   :  { %2454 = vpush %v228_v40 }
 0x18f   :  { %2456 = vpush %v238_v41 }
 0x1bf   :  { %s2455_s2 = spop %2454 }
 0x1c0   :  { %s2457_s26 = spop %2456 }
 0x1c1   :  { %s240_s4 = sadd.f32 %s2457_s26, %s2455_s2 }
 0x1c3   :  { %s243_s27 = smul.f32 0.00024414063, %s240_s4 }
 0x1c5   :  { %v246_v42 = vstv %s243_s27 }
 0x1c6   :  { %v247_v43 = vsub.f32 %v135_v21, %v246_v42  ;;  %v449_v44 = vsub.f32 %v218_v22, %v246_v42  ;;  %v248_v45 = vsub.f32 %v136_v23, %v246_v42  ;;  %v450_v46 = vsub.f32 %v219_v24, %v246_v42 }
 0x1c8   :  { %249 = vst [vmem:[%s2884_s7] sm:$0xff] %v247_v43  ;;  %2098 = vst [vmem:[%s2884_s7 + $0x10] sm:$0xff] %v449_v44  ;;  %255 = vmatprep.subr.mxu0 %v248_v45  ;;  %454 = vmatprep.subr.mxu1 %v450_v46 }
 0x1c9   :  { %250 = vst [vmem:[%s2884_s7 + $0x8] sm:$0xff] %v248_v45  ;;  %2099 = vst [vmem:[%s2884_s7 + $0x18] sm:$0xff] %v450_v46  ;;  %256 = vmatpush1.msra.mxu0 %v247_v43  ;;  %455 = vmatpush1.msra.mxu1 %v449_v44  ;;  %v2626_v45 = vmov 1  }
 0x1ca   :  { %2097 = vmatmul.mubr.msk.f32.vlgmr.msra.gmra.mrb[2].mxu0 %vm251_vm2, %v244_v47  ;;  %2100 = vmatmul.mubr.msk.f32.vlgmr.msra.gmra.mrb[2].mxu1 %vm251_vm2, %v244_v47 }
 0x1cb   :  { %2278 = vmatprep.subr.bf16.mxu0 %v2469_v48  ;;  %2300 = vmatprep.subr.bf16.mxu1 %v2470_v49 }
 0x1cc   :  { %2279 = vmatpush3.bf16.msra.mxu0 %v2471_v50  ;;  %2301 = vmatpush3.bf16.msra.mxu1 %v2472_v51 }
 0x1cd   :  { %2280 = vmatprep.subr.bf16.mxu0 %v2473_v52  ;;  %2302 = vmatprep.subr.bf16.mxu1 %v2474_v53 }
 0x1d0   :  { %2281 = vmatpush3.bf16.msra.mxu0 %v2475_v54  ;;  %2303 = vmatpush3.bf16.msra.mxu1 %v2476_v55 }
 0x1d1   :  { %2282 = vmatprep.subr.bf16.mxu0 %v2477_v56  ;;  %2304 = vmatprep.subr.bf16.mxu1 %v2478_v57 }
 0x1d4   :  { %2283 = vmatpush3.bf16.msra.mxu0 %v2479_v58  ;;  %2305 = vmatpush3.bf16.msra.mxu1 %v2480_v59 }
 0x1d5   :  { %2284 = vmatprep.subr.bf16.mxu0 %v2481_v60  ;;  %2306 = vmatprep.subr.bf16.mxu1 %v2482_v61 }
 0x1d8   :  { %2285 = vmatpush3.bf16.msra.mxu0 %v2483_v62  ;;  %2307 = vmatpush3.bf16.msra.mxu1 %v2484_v63 }
 0x1d9   :  { %2286 = vmatprep.subr.bf16.mxu0 %v2485_v0  ;;  %2308 = vmatprep.subr.bf16.mxu1 %v2486_v1 }
 0x1dc   :  { %2287 = vmatpush3.bf16.msra.mxu0 %v2487_v2  ;;  %2309 = vmatpush3.bf16.msra.mxu1 %v2488_v3 }
 0x1dd   :  { %2288 = vmatprep.subr.bf16.mxu0 %v2489_v4  ;;  %2310 = vmatprep.subr.bf16.mxu1 %v2490_v5 }
 0x1e0   :  { %2289 = vmatpush3.bf16.msra.mxu0 %v2491_v6  ;;  %2311 = vmatpush3.bf16.msra.mxu1 %v2492_v7 }
 0x1e1   :  { %2290 = vmatprep.subr.bf16.mxu0 %v2493_v8  ;;  %2312 = vmatprep.subr.bf16.mxu1 %v2494_v9 }
 0x1e4   :  { %2291 = vmatpush3.bf16.msra.mxu0 %v2495_v10  ;;  %2313 = vmatpush3.bf16.msra.mxu1 %v2496_v11 }
 0x1e5   :  { %2292 = vmatprep.subr.bf16.mxu0 %v2497_v12  ;;  %2314 = vmatprep.subr.bf16.mxu1 %v2498_v13 }
 0x1e8   :  { %2293 = vmatpush3.bf16.msra.mxu0 %v2499_v14  ;;  %2315 = vmatpush3.bf16.msra.mxu1 %v2500_v15 }
 0x1e9   :  { %2322 = vmatprep.subr.bf16.mxu0 %v2501_v16  ;;  %2344 = vmatprep.subr.bf16.mxu1 %v2502_v17 }
 0x29d   :  { %v321_v19 = vpop.f32.mrb[2].mxu0  ;;  %v520_v20 = vpop.f32.mrb[2].mxu1 }
 0x29e   :  { %v326_v21 = vmul.f32 2.0, %v321_v19  ;;  %v525_v22 = vmul.f32 2.0, %v520_v20  ;;  %v323_v23 = vpop.f32.mrb[3].mxu0  ;;  %v522_v24 = vpop.f32.mrb[3].mxu1 }
 0x29f   :  { %v327_v25 = vmul.f32 2.0, %v323_v23  ;;  %v526_v26 = vmul.f32 2.0, %v522_v24 }
 0x2a0   :  { %v2719_v27 = vsub.f32 %v331_v18, %v326_v21  ;;  %v2725_v30 = vsub.f32 %v331_v18, %v525_v22 }
 0x2a1   :  { %v2721_v28 = vsub.f32 %v331_v18, %v327_v25  ;;  %v2723_v29 = vsub.f32 %v331_v18, %v526_v26 }
 0x2a2   :  { %v337_v31 = vrot.slane %v2719_v27, 1  ;;  %v359_v32 = vrot.slane %v2719_v27, 2  ;;  %v377_v33 = vrot.slane %v2719_v27, 3  ;;  %v395_v37 = vrot.slane %v2719_v27, 4 }
 0x2a3   :  { %v338_v34 = vrot.slane %v2721_v28, 1  ;;  %v360_v35 = vrot.slane %v2721_v28, 2  ;;  %v378_v36 = vrot.slane %v2721_v28, 3  ;;  %v396_v38 = vrot.slane %v2721_v28, 4 }
 0x2a4   :  { %v414_v39 = vrot.slane %v2721_v28, 5  ;;  %v432_v40 = vrot.slane %v2721_v28, 6  ;;  %v532_v41 = vrot.slane %v2723_v29, 1  ;;  %v554_v43 = vrot.slane %v2723_v29, 2 }
 0x2a5   :  { %v342_v42 = vmin.f32 %v2721_v28, %v338_v34  ;;  %vm344_vm3 = vcmp.le.f32.partialorder %v2721_v28, %v338_v34  ;;  %v572_v44 = vrot.slane %v2723_v29, 3  ;;  %v590_v48 = vrot.slane %v2723_v29, 4 }
 0x2a6   :  { %v346_v46 = vsel %vm344_vm3, 0, %v2626_v45  ;;  %v536_v47 = vmin.f32 %v2723_v29, %v532_v41  ;;  %vm538_vm4 = vcmp.le.f32.partialorder %v2723_v29, %v532_v41  ;;  %v608_v56 = vrot.slane %v2723_v29, 5 }
 0x2a7   :  { %v350_v49 = vrot.slane %v342_v42, 6  ;;  %v356_v50 = vrot.slane %v346_v46, 6  ;;  %v364_v51 = vmin.f32 %v342_v42, %v360_v35  ;;  %v540_v52 = vsel %vm538_vm4, 0, %v2626_v45 }
 0x2a8   :  { %v544_v53 = vrot.slane %v536_v47, 6  ;;  %v550_v54 = vrot.slane %v540_v52, 6  ;;  %v558_v55 = vmin.f32 %v536_v47, %v554_v43  ;;  %v626_v59 = vrot.slane %v2723_v29, 6 }
 0x2a9   :  { %vm354_vm7 = vcmp.lt.f32.partialorder %v2721_v28, %v350_v49  ;;  %v368_v57 = vrot.slane %v364_v51, 5  ;;  %v382_v58 = vmin.f32 %v364_v51, %v378_v36  ;;  %v644_v5 = vrot.slane %v540_v52, 7 }
 0x2aa   :  { %v358_v60 = vsel %vm354_vm7, 2, %v356_v50  ;;  %vm548_vm8 = vcmp.lt.f32.partialorder %v2723_v29, %v544_v53  ;;  %v562_v61 = vrot.slane %v558_v55, 5  ;;  %v576_v62 = vmin.f32 %v558_v55, %v572_v44 }
 0x2ab   :  { %vm372_vm10 = vcmp.lt.f32.partialorder %v2721_v28, %v368_v57  ;;  %v374_v63 = vrot.slane %v358_v60, 7  ;;  %v386_v0 = vrot.slane %v382_v58, 4  ;;  %v400_v1 = vmin.f32 %v382_v58, %v396_v38 }
 0x2ac   :  { %v552_v2 = vsel %vm548_vm8, 2, %v550_v54  ;;  %v580_v3 = vrot.slane %v576_v62, 4  ;;  %v594_v4 = vmin.f32 %v576_v62, %v590_v48  ;;  %vm566_vm11 = vcmp.lt.f32.partialorder %v2723_v29, %v562_v61 }
 0x2ad   :  { %v376_v6 = vsel %vm372_vm10, 3, %v374_v63  ;;  %v404_v7 = vrot.slane %v400_v1, 3  ;;  %v418_v8 = vmin.f32 %v400_v1, %v414_v39  ;;  %vm390_vm12 = vcmp.lt.f32.partialorder %v2721_v28, %v386_v0 }
 0x2ae   :  { %v392_v9 = vrot.slane %v376_v6, 7  ;;  %v568_v10 = vrot.slane %v552_v2, 7  ;;  %v598_v11 = vrot.slane %v594_v4, 3  ;;  %vm2755_vm13 = vcmp.lt.f32.partialorder %v2723_v29, %v580_v3 }
 0x2af   :  { %v422_v12 = vrot.slane %v418_v8, 2  ;;  %v436_v13 = vmin.f32 %v418_v8, %v432_v40  ;;  %v612_v15 = vmin.f32 %v594_v4, %v608_v56  ;;  %vm408_vm14 = vcmp.lt.f32.partialorder %v2721_v28, %v404_v7 }
 0x2b0   :  { %v394_v16 = vsel %vm390_vm12, 4, %v392_v9  ;;  %v570_v17 = vsel %vm566_vm11, 3, %v568_v10  ;;  %v646_v18 = vrot.slane %v376_v6, 1  ;;  %vm2761_vm15 = vcmp.lt.f32.partialorder %v2723_v29, %v598_v11 }
 0x2b1   :  { %v410_v19 = vrot.slane %v394_v16, 7  ;;  %v440_v20 = vrot.slane %v436_v13, 1  ;;  %v586_v21 = vrot.slane %v570_v17, 7  ;;  %v616_v23 = vrot.slane %v612_v15, 2 }
 0x2b2   :  { %v630_v24 = vmin.f32 %v612_v15, %v626_v59  ;;  %v653_v25 = vsel %vm651_vm5, %v346_v46, %v644_v5  ;;  %v341_v26 = vmin.f32 %v2719_v27, %v337_v31  ;;  %vm426_vm1 = vcmp.lt.f32.partialorder %v2721_v28, %v422_v12 }
 0x2b3   :  { %v412_v34 = vsel %vm408_vm14, 5, %v410_v19  ;;  %v588_v35 = vsel %vm2755_vm13, 4, %v586_v21  ;;  %v656_v36 = vsel %vm654_vm6, %v653_v25, %v646_v18  ;;  %vm2774_vm2 = vcmp.lt.f32.partialorder %v2721_v28, %v440_v20 }
 0x2b4   :  { %v428_v38 = vrot.slane %v412_v34, 7  ;;  %v604_v40 = vrot.slane %v588_v35, 7  ;;  %v634_v41 = vrot.slane %v630_v24, 1  ;;  %vm662_vm3 = vcmask 1044480  }
 0x2b5   :  { %v659_v42 = vsel %vm657_vm9, %v656_v36, %v570_v17  ;;  %vm343_vm4 = vcmp.le.f32.partialorder %v2719_v27, %v337_v31  ;;  %v349_v43 = vrot.slane %v341_v26, 6  ;;  %v363_v44 = vmin.f32 %v341_v26, %v359_v32 }
 0x2b6   :  { %v430_v46 = vsel %vm426_vm1, 6, %v428_v38  ;;  %v606_v28 = vsel %vm2761_vm15, 5, %v604_v40  ;;  %vm620_vm7 = vcmp.lt.f32.partialorder %v2723_v29, %v616_v23  ;;  %v2788_v47 = vsel %vm343_vm4, 0, %v2626_v45 }
 0x2b7   :  { %v446_v48 = vrot.slane %v430_v46, 7  ;;  %v622_v49 = vrot.slane %v606_v28, 7  ;;  %vm353_vm8 = vcmp.lt.f32.partialorder %v2719_v27, %v349_v43  ;;  %v355_v50 = vrot.slane %v2788_v47, 6 }
 0x2b8   :  { %vm2793_vm10 = vcmp.lt.f32.partialorder %v2723_v29, %v634_v41  ;;  %v367_v32 = vrot.slane %v363_v44, 5  ;;  %v381_v51 = vmin.f32 %v363_v44, %v377_v33  ;;  %v413_v52 = vrot.slane %v2719_v27, 5 }
 0x2b9   :  { %v448_v53 = vsel %vm2774_vm2, 7, %v446_v48  ;;  %v624_v54 = vsel %vm620_vm7, 6, %v622_v49  ;;  %v357_v55 = vsel %vm353_vm8, 2, %v355_v50  ;;  %v531_v56 = vrot.slane %v2725_v30, 1 }
 0x2ba   :  { %v640_v57 = vrot.slane %v624_v54, 7  ;;  %v648_v58 = vrot.slane %v448_v53, 3  ;;  %vm371_vm11 = vcmp.lt.f32.partialorder %v2719_v27, %v367_v32  ;;  %v373_v29 = vrot.slane %v357_v55, 7 }
 0x2bb   :  { %v385_v59 = vrot.slane %v381_v51, 4  ;;  %v399_v60 = vmin.f32 %v381_v51, %v395_v37  ;;  %v535_v33 = vmin.f32 %v2725_v30, %v531_v56  ;;  %vm537_vm12 = vcmp.le.f32.partialorder %v2725_v30, %v531_v56 }
 0x2bc   :  { %v642_v61 = vsel %vm2793_vm10, 7, %v640_v57  ;;  %v661_v62 = vsel %vm57_vm0, %v659_v42, %v648_v58  ;;  %v375_v63 = vsel %vm371_vm11, 3, %v373_v29  ;;  %v539_v0 = vsel %vm537_vm12, 0, %v2626_v45  ;;  %v2503_v58 = vld [vmem:[#allocation2 + $0x100] sm:$0xff]  }
 0x2bd   :  { %v650_v1 = vrot.slane %v642_v61, 2  ;;  %vm389_vm13 = vcmp.lt.f32.partialorder %v2719_v27, %v385_v59  ;;  %v391_v2 = vrot.slane %v375_v63, 7  ;;  %v403_v3 = vrot.slane %v399_v60, 3  ;;  %v2504_v29 = vld [vmem:[#allocation2 + $0x180] sm:$0xff]   ;;  %v2505_v59 = vld [vmem:[#allocation2 + $0x148] sm:$0xff]   ;;  %v2509_v61 = vld [vmem:[#allocation2 + $0x150] sm:$0xff]  }
 0x2be   :  { %v417_v4 = vmin.f32 %v399_v60, %v413_v52  ;;  %v543_v5 = vrot.slane %v535_v33, 6  ;;  %v549_v37 = vrot.slane %v539_v0, 6  ;;  %v553_v6 = vrot.slane %v2725_v30, 2  ;;  %v2507_v60 = vld [vmem:[#allocation2 + $0x108] sm:$0xff]  }
 0x2bf   :  { %v2815_v7 = vsel %vm662_vm3, %v661_v62, %v650_v1  ;;  %v393_v8 = vsel %vm389_vm13, 4, %v391_v2  ;;  %v431_v9 = vrot.slane %v2719_v27, 6  ;;  %vm407_vm2 = vcmp.lt.f32.partialorder %v2719_v27, %v403_v3  ;;  %v2510_v62 = vld [vmem:[#allocation2 + $0x1d0] sm:$0xff]   ;;  %v2513_v1 = vld [vmem:[#allocation2 + $0x158] sm:$0xff]  }
 0x2c0   :  { %vm666_vm14 = vcmp.eq.s32.totalorder %v2815_v7, 0  ;;  %vm672_vm15 = vcmp.eq.s32.totalorder %v2815_v7, 1  ;;  %v409_v45 = vrot.slane %v393_v8, 7  ;;  %v421_v10 = vrot.slane %v417_v4, 2  ;;  %v2514_v2 = vld [vmem:[#allocation2 + $0x1d8] sm:$0xff]   ;;  %v2520_v8 = vld [vmem:[#allocation2 + $0x1a0] sm:$0xff]  }
 0x2c1   :  { %vm2246_vm1 = vmpackc.low %vm666_vm14, %vm666_vm14  ;;  %v435_v11 = vmin.f32 %v417_v4, %v431_v9  ;;  %vm547_vm4 = vcmp.lt.f32.partialorder %v2725_v30, %v543_v5  ;;  %v557_v12 = vmin.f32 %v535_v33, %v553_v6  ;;  %v2627_v13 = vmov 1.0|1.0   ;;  %v2508_v33 = vld [vmem:[#allocation2 + $0x188] sm:$0xff]   ;;  %v2515_v3 = vld [vmem:[#allocation2 + $0x118] sm:$0xff]  }
 0x2c2   :  { %2247 = vmatprep.mubr.msk.bf16.mxu0 %vm2246_vm1, %v2627_v13  ;;  %vm2250_vm7 = vmpackc.low %vm672_vm15, %vm672_vm15  ;;  %v411_v14 = vsel %vm407_vm2, 5, %v409_v45  ;;  %v551_v15 = vsel %vm547_vm4, 2, %v549_v37  ;;  %v571_v16 = vrot.slane %v2725_v30, 3  ;;  %vm425_vm8 = vcmp.lt.f32.partialorder %v2719_v27, %v421_v10  ;;  %v2516_v4 = vld [vmem:[#allocation2 + $0x198] sm:$0xff]   ;;  %v2517_v5 = vld [vmem:[#allocation2 + $0x160] sm:$0xff]  }
 0x2c3   :  { %2251 = vmatprep.mubr.msk.bf16.mxu1 %vm2250_vm7, %v2627_v13  ;;  %v427_v17 = vrot.slane %v411_v14, 7  ;;  %v439_v18 = vrot.slane %v435_v11, 1  ;;  %v561_v19 = vrot.slane %v557_v12, 5  ;;  %v567_v20 = vrot.slane %v551_v15, 7  ;;  %v2518_v37 = vld [vmem:[#allocation2 + $0x1e0] sm:$0xff]   ;;  %v2521_v9 = vld [vmem:[#allocation2 + $0x168] sm:$0xff]  }
 0x2c4   :  { %v575_v21 = vmin.f32 %v557_v12, %v571_v16  ;;  %v589_v22 = vrot.slane %v2725_v30, 4  ;;  %v643_v23 = vrot.slane %v539_v0, 7  ;;  %v607_v25 = vrot.slane %v2725_v30, 5  ;;  %v2512_v0 = vld [vmem:[#allocation2 + $0x190] sm:$0xff]   ;;  %v2519_v6 = vld [vmem:[#allocation2 + $0x120] sm:$0xff]   ;;  %v2522_v45 = vld [vmem:[#allocation2 + $0x1e8] sm:$0xff]  }
 0x2c5   :  { %v429_v24 = vsel %vm425_vm8, 6, %v427_v17  ;;  %vm565_vm10 = vcmp.lt.f32.partialorder %v2725_v30, %v561_v19  ;;  %v645_v26 = vrot.slane %v375_v63, 1  ;;  %vm443_vm11 = vcmp.lt.f32.partialorder %v2719_v27, %v439_v18  ;;  %v2511_v63 = vld [vmem:[#allocation2 + $0x110] sm:$0xff]   ;;  %v2523_v10 = vld [vmem:[#allocation2 + $0x128] sm:$0xff]   ;;  %v2529_v17 = vld [vmem:[#allocation2 + $0x178] sm:$0xff]  }
 0x2c6   :  { %v445_v34 = vrot.slane %v429_v24, 7  ;;  %v569_v35 = vsel %vm565_vm10, 3, %v567_v20  ;;  %v579_v36 = vrot.slane %v575_v21, 4  ;;  %v593_v38 = vmin.f32 %v575_v21, %v589_v22  ;;  %v2524_v11 = vld [vmem:[#allocation2 + $0x1a8] sm:$0xff]   ;;  %v2525_v12 = vld [vmem:[#allocation2 + $0x170] sm:$0xff]   ;;  %v2530_v18 = vld [vmem:[#allocation2 + $0x1f8] sm:$0xff]  }
 0x2c7   :  { %v585_v39 = vrot.slane %v569_v35, 7  ;;  %v625_v40 = vrot.slane %v2725_v30, 6  ;;  %v652_v41 = vsel %vm651_vm5, %v2788_v47, %v643_v23  ;;  %vm684_vm1 = vcmp.eq.s32.totalorder %v2815_v7, 3  ;;  %v2526_v14 = vld [vmem:[#allocation2 + $0x1f0] sm:$0xff]   ;;  %v2531_v19 = vld [vmem:[#allocation2 + $0x138] sm:$0xff]   ;;  %v2533_v21 = vld [vmem:[#allocation2 + $0x240] sm:$0xff]  }
 0x2c8   :  { %v447_v42 = vsel %vm443_vm11, 7, %v445_v34  ;;  %vm583_vm12 = vcmp.lt.f32.partialorder %v2725_v30, %v579_v36  ;;  %v597_v43 = vrot.slane %v593_v38, 3  ;;  %v611_v44 = vmin.f32 %v593_v38, %v607_v25  ;;  %vm2258_vm4 = vmpackc.low %vm684_vm1, %vm684_vm1  ;;  %v2527_v15 = vld [vmem:[#allocation2 + $0x130] sm:$0xff]   ;;  %v2532_v20 = vld [vmem:[#allocation2 + $0x1b8] sm:$0xff]  }
 0x2c9   :  { %v587_v46 = vsel %vm583_vm12, 4, %v585_v39  ;;  %v647_v28 = vrot.slane %v447_v42, 3  ;;  %v655_v48 = vsel %vm654_vm6, %v652_v41, %v645_v26  ;;  %v2528_v16 = vld [vmem:[#allocation2 + $0x1b0] sm:$0xff]   ;;  %v2534_v22 = vld [vmem:[#allocation2 + $0x2c0] sm:$0xff]   ;;  %vm690_vm10 = vcmp.eq.s32.totalorder %v2815_v7, 4  ;;  %v2537_v25 = vld [vmem:[#allocation2 + $0x248] sm:$0xff]  }
 0x2ca   :  { %v603_v49 = vrot.slane %v587_v46, 7  ;;  %v615_v50 = vrot.slane %v611_v44, 2  ;;  %v629_v31 = vmin.f32 %v611_v44, %v625_v40  ;;  %vm601_vm13 = vcmp.lt.f32.partialorder %v2725_v30, %v597_v43  ;;  %v2535_v23 = vld [vmem:[#allocation2 + $0x200] sm:$0xff]   ;;  %v2538_v26 = vld [vmem:[#allocation2 + $0x2c8] sm:$0xff]   ;;  %v2541_v36 = vld [vmem:[#allocation2 + $0x250] sm:$0xff]  }
 0x2cb   :  { %v658_v27 = vsel %vm657_vm9, %v655_v48, %v569_v35  ;;  %v2536_v24 = vld [vmem:[#allocation2 + $0x280] sm:$0xff]   ;;  %vm696_vm12 = vcmp.eq.s32.totalorder %v2815_v7, 5  ;;  %v2539_v34 = vld [vmem:[#allocation2 + $0x208] sm:$0xff]   ;;  %v2542_v38 = vld [vmem:[#allocation2 + $0x2d0] sm:$0xff]   ;;  %vm708_vm1 = vcmp.eq.s32.totalorder %v2815_v7, 7 }
 0x2cc   :  { %v605_v32 = vsel %vm601_vm13, 5, %v603_v49  ;;  %v660_v51 = vsel %vm57_vm0, %v658_v27, %v647_v28  ;;  %v633_v52 = vrot.slane %v629_v31, 1  ;;  %vm619_vm5 = vcmp.lt.f32.partialorder %v2725_v30, %v615_v50  ;;  %v2540_v35 = vld [vmem:[#allocation2 + $0x288] sm:$0xff]   ;;  %v2543_v39 = vld [vmem:[#allocation2 + $0x210] sm:$0xff]   ;;  %v2545_v41 = vld [vmem:[#allocation2 + $0x258] sm:$0xff]  }
 0x2cd   :  { %v621_v47 = vrot.slane %v605_v32, 7  ;;  %vm678_vm0 = vcmp.eq.s32.totalorder %v2815_v7, 2  ;;  %v2544_v40 = vld [vmem:[#allocation2 + $0x290] sm:$0xff]   ;;  %v2546_v42 = vld [vmem:[#allocation2 + $0x2d8] sm:$0xff]   ;;  %v2549_v46 = vld [vmem:[#allocation2 + $0x260] sm:$0xff]  }
 0x2ce   :  { %vm637_vm14 = vcmp.lt.f32.partialorder %v2725_v30, %v633_v52  ;;  %v2506_v30 = vld [vmem:[#allocation2 + $0x1c8] sm:$0xff]   ;;  %v2547_v43 = vld [vmem:[#allocation2 + $0x218] sm:$0xff]   ;;  %v2550_v28 = vld [vmem:[#allocation2 + $0x2e0] sm:$0xff]  }
 0x2cf   :  { %v623_v53 = vsel %vm619_vm5, 6, %v621_v47  ;;  %vm2262_vm5 = vmpackc.low %vm690_vm10, %vm690_vm10  ;;  %v2548_v44 = vld [vmem:[#allocation2 + $0x298] sm:$0xff]   ;;  %v2551_v48 = vld [vmem:[#allocation2 + $0x220] sm:$0xff]  }
 0x2d0   :  { %v639_v54 = vrot.slane %v623_v53, 7  ;;  %v2552_v49 = vld [vmem:[#allocation2 + $0x2a0] sm:$0xff]   ;;  %v2553_v50 = vld [vmem:[#allocation2 + $0x268] sm:$0xff]   ;;  %v2558_v47 = vld [vmem:[#allocation2 + $0x2f0] sm:$0xff]  }
 0x2d1   :  { %v2554_v31 = vld [vmem:[#allocation2 + $0x2e8] sm:$0xff]   ;;  %v2559_v52 = vld [vmem:[#allocation2 + $0x230] sm:$0xff]  }
 0x2d2   :  { %v641_v55 = vsel %vm637_vm14, 7, %v639_v54  ;;  %vm2266_vm14 = vmpackc.low %vm696_vm12, %vm696_vm12  ;;  %v2555_v27 = vld [vmem:[#allocation2 + $0x228] sm:$0xff]   ;;  %v2560_v53 = vld [vmem:[#allocation2 + $0x2b0] sm:$0xff]  }
 0x2d3   :  { %v649_v56 = vrot.slane %v641_v55, 2  ;;  %v2556_v32 = vld [vmem:[#allocation2 + $0x2a8] sm:$0xff]   ;;  %v2561_v54 = vld [vmem:[#allocation2 + $0x278] sm:$0xff]  }
 0x2d4   :  { %v2562_v55 = vld [vmem:[#allocation2 + $0x2f8] sm:$0xff]  }
 0x2d5   :  { %v2841_v57 = vsel %vm662_vm3, %v660_v51, %v649_v56  ;;  %vm2254_vm3 = vmpackc.low %vm678_vm0, %vm678_vm0  ;;  %v2557_v51 = vld [vmem:[#allocation2 + $0x270] sm:$0xff]   ;;  %v2563_v56 = vld [vmem:[#allocation2 + $0x238] sm:$0xff]   ;;  %vm702_vm0 = vcmp.eq.s32.totalorder %v2815_v7, 6 }
 0x2d6   :  { %vm665_vm6 = vcmp.eq.s32.totalorder %v2841_v57, 0  ;;  %vm671_vm9 = vcmp.eq.s32.totalorder %v2841_v57, 1  ;;  %vm677_vm7 = vcmp.eq.s32.totalorder %v2841_v57, 2  ;;  %vm683_vm8 = vcmp.eq.s32.totalorder %v2841_v57, 3  ;;  %v2574_v7 = vld [vmem:[#allocation2 + $0x3d0] sm:$0xff]  }
 0x2d7   :  { %vm2248_vm15 = vmpackc.low %vm665_vm6, %vm665_vm6  ;;  %vm689_vm6 = vcmp.eq.s32.totalorder %v2841_v57, 4 }
 0x2d8   :  { %2249 = vmatmul.mubr.msk.bf16.vlgmr.msra.gmra.mrb[4].mxu0 %vm2248_vm15, %v2627_v13  ;;  %vm2252_vm2 = vmpackc.low %vm671_vm9, %vm671_vm9  ;;  %vm695_vm9 = vcmp.eq.s32.totalorder %v2841_v57, 5 }
 0x2d9   :  { %2253 = vmatmul.mubr.msk.bf16.vlgmr.msra.gmra.mrb[4].mxu1 %vm2252_vm2, %v2627_v13  ;;  %2323 = vmatpush3.bf16.msra.mxu0 %v2503_v58  ;;  %vm2256_vm11 = vmpackc.low %vm677_vm7, %vm677_vm7  ;;  %v2564_v58 = vld [vmem:[#allocation2 + $0x2b8] sm:$0xff]   ;;  %vm701_vm7 = vcmp.eq.s32.totalorder %v2841_v57, 6 }
 0x2da   :  { %2345 = vmatpush3.bf16.msra.mxu1 %v2504_v29  ;;  %2255 = vmatprep.mubr.msk.bf16.mxu0 %vm2254_vm3, %v2627_v13  ;;  %vm2260_vm13 = vmpackc.low %vm683_vm8, %vm683_vm8  ;;  %v2565_v29 = vld [vmem:[#allocation2 + $0x340] sm:$0xff]   ;;  %vm707_vm8 = vcmp.eq.s32.totalorder %v2841_v57, 7 }
 0x2db   :  { %2259 = vmatprep.mubr.msk.bf16.mxu1 %vm2258_vm4, %v2627_v13  ;;  %2324 = vmatprep.subr.bf16.mxu0 %v2505_v59  ;;  %v2566_v59 = vld [vmem:[#allocation2 + $0x3c0] sm:$0xff]   ;;  %vm2264_vm15 = vmpackc.low %vm689_vm6, %vm689_vm6 }
 0x2dc   :  { %2346 = vmatprep.subr.bf16.mxu1 %v2506_v30  ;;  %v2567_v30 = vld [vmem:[#allocation2 + $0x300] sm:$0xff]   ;;  %vm2268_vm2 = vmpackc.low %vm695_vm9, %vm695_vm9 }
 0x2dd   :  { %2325 = vmatpush3.bf16.msra.mxu0 %v2507_v60  ;;  %v2568_v60 = vld [vmem:[#allocation2 + $0x380] sm:$0xff]   ;;  %vm2270_vm3 = vmpackc.low %vm702_vm0, %vm702_vm0 }
 0x2de   :  { %2347 = vmatpush3.bf16.msra.mxu1 %v2508_v33  ;;  %2326 = vmatprep.subr.bf16.mxu0 %v2509_v61  ;;  %v2569_v33 = vld [vmem:[#allocation2 + $0x348] sm:$0xff]   ;;  %vm2274_vm4 = vmpackc.low %vm708_vm1, %vm708_vm1 }
 0x2df   :  { %2348 = vmatprep.subr.bf16.mxu1 %v2510_v62  ;;  %v2570_v61 = vld [vmem:[#allocation2 + $0x3c8] sm:$0xff]   ;;  %vm2272_vm10 = vmpackc.low %vm701_vm7, %vm701_vm7 }
 0x2e0   :  { %v2571_v62 = vld [vmem:[#allocation2 + $0x308] sm:$0xff]  }
 0x2e1   :  { %2327 = vmatpush3.bf16.msra.mxu0 %v2511_v63  ;;  %v2572_v63 = vld [vmem:[#allocation2 + $0x388] sm:$0xff]  }
 0x2e2   :  { %2349 = vmatpush3.bf16.msra.mxu1 %v2512_v0  ;;  %2328 = vmatprep.subr.bf16.mxu0 %v2513_v1  ;;  %v2573_v0 = vld [vmem:[#allocation2 + $0x350] sm:$0xff]  }
 0x2e3   :  { %2350 = vmatprep.subr.bf16.mxu1 %v2514_v2  ;;  %v2575_v1 = vld [vmem:[#allocation2 + $0x310] sm:$0xff]  }
 0x2e4   :  { %v2576_v2 = vld [vmem:[#allocation2 + $0x390] sm:$0xff]  }
 0x2e5   :  { %2329 = vmatpush3.bf16.msra.mxu0 %v2515_v3  ;;  %v2577_v3 = vld [vmem:[#allocation2 + $0x358] sm:$0xff]  }
 0x2e6   :  { %2351 = vmatpush3.bf16.msra.mxu1 %v2516_v4  ;;  %2330 = vmatprep.subr.bf16.mxu0 %v2517_v5  ;;  %v2578_v4 = vld [vmem:[#allocation2 + $0x3d8] sm:$0xff]  }
 0x2e7   :  { %2352 = vmatprep.subr.bf16.mxu1 %v2518_v37  ;;  %v2579_v5 = vld [vmem:[#allocation2 + $0x318] sm:$0xff]  }
 0x2e8   :  { %v2580_v37 = vld [vmem:[#allocation2 + $0x398] sm:$0xff]  }
 0x2e9   :  { %2331 = vmatpush3.bf16.msra.mxu0 %v2519_v6  ;;  %v2581_v6 = vld [vmem:[#allocation2 + $0x360] sm:$0xff]  }
 0x2ea   :  { %2353 = vmatpush3.bf16.msra.mxu1 %v2520_v8  ;;  %2332 = vmatprep.subr.bf16.mxu0 %v2521_v9  ;;  %v2582_v8 = vld [vmem:[#allocation2 + $0x3e0] sm:$0xff]  }
 0x2eb   :  { %2354 = vmatprep.subr.bf16.mxu1 %v2522_v45  ;;  %v2583_v9 = vld [vmem:[#allocation2 + $0x320] sm:$0xff]  }
 0x2ec   :  { %v2584_v45 = vld [vmem:[#allocation2 + $0x3a0] sm:$0xff]  }
 0x2ed   :  { %2333 = vmatpush3.bf16.msra.mxu0 %v2523_v10  ;;  %v2585_v10 = vld [vmem:[#allocation2 + $0x368] sm:$0xff]  }
 0x2ee   :  { %2355 = vmatpush3.bf16.msra.mxu1 %v2524_v11  ;;  %2334 = vmatprep.subr.bf16.mxu0 %v2525_v12  ;;  %v2586_v11 = vld [vmem:[#allocation2 + $0x3e8] sm:$0xff]  }
 0x2ef   :  { %2356 = vmatprep.subr.bf16.mxu1 %v2526_v14  ;;  %v2587_v12 = vld [vmem:[#allocation2 + $0x328] sm:$0xff]  }
 0x2f0   :  { %v2588_v14 = vld [vmem:[#allocation2 + $0x3a8] sm:$0xff]  }
 0x2f1   :  { %2335 = vmatpush3.bf16.msra.mxu0 %v2527_v15  ;;  %v2589_v15 = vld [vmem:[#allocation2 + $0x370] sm:$0xff]  }
 0x2f2   :  { %2357 = vmatpush3.bf16.msra.mxu1 %v2528_v16  ;;  %2336 = vmatprep.subr.bf16.mxu0 %v2529_v17  ;;  %v2590_v16 = vld [vmem:[#allocation2 + $0x3f0] sm:$0xff]  }
 0x2f3   :  { %2358 = vmatprep.subr.bf16.mxu1 %v2530_v18  ;;  %v2591_v17 = vld [vmem:[#allocation2 + $0x330] sm:$0xff]  }
 0x2f4   :  { %v2592_v18 = vld [vmem:[#allocation2 + $0x3b0] sm:$0xff]  }
 0x2f5   :  { %2337 = vmatpush3.bf16.msra.mxu0 %v2531_v19  ;;  %v2593_v19 = vld [vmem:[#allocation2 + $0x378] sm:$0xff]  }
 0x2f6   :  { %2359 = vmatpush3.bf16.msra.mxu1 %v2532_v20  ;;  %2366 = vmatprep.subr.bf16.mxu0 %v2533_v21  ;;  %v2594_v20 = vld [vmem:[#allocation2 + $0x3f8] sm:$0xff]  }
 0x2f7   :  { %2388 = vmatprep.subr.bf16.mxu1 %v2534_v22  ;;  %v2595_v21 = vld [vmem:[#allocation2 + $0x338] sm:$0xff]  }
 0x2f8   :  { %2257 = vmatmul.mubr.msk.bf16.vlgmr.msra.gmra.mrb[8].mxu0 %vm2256_vm11, %v2627_v13  ;;  %v2596_v22 = vld [vmem:[#allocation2 + $0x3b8] sm:$0xff]   ;;  %vm2276_vm11 = vmpackc.low %vm707_vm8, %vm707_vm8 }
 0x2f9   :  { %2261 = vmatmul.mubr.msk.bf16.vlgmr.msra.gmra.mrb[8].mxu1 %vm2260_vm13, %v2627_v13  ;;  %2367 = vmatpush3.bf16.msra.mxu0 %v2535_v23 }
 0x2fa   :  { %2263 = vmatprep.mubr.msk.bf16.mxu0 %vm2262_vm5, %v2627_v13  ;;  %2389 = vmatpush3.bf16.msra.mxu1 %v2536_v24 }
 0x2fb   :  { %2267 = vmatprep.mubr.msk.bf16.mxu1 %vm2266_vm14, %v2627_v13  ;;  %2368 = vmatprep.subr.bf16.mxu0 %v2537_v25  ;;  %v2117_v25 = vld [vmem:[%s2883_s6] ss:$0 sm:$0xff] }
 0x2fc   :  { %2390 = vmatprep.subr.bf16.mxu1 %v2538_v26 }
 0x2fd   :  { %2369 = vmatpush3.bf16.msra.mxu0 %v2539_v34 }
 0x2fe   :  { %2391 = vmatpush3.bf16.msra.mxu1 %v2540_v35  ;;  %2370 = vmatprep.subr.bf16.mxu0 %v2541_v36 }
 0x2ff   :  { %2392 = vmatprep.subr.bf16.mxu1 %v2542_v38 }
 0x301   :  { %2371 = vmatpush3.bf16.msra.mxu0 %v2543_v39 }
 0x302   :  { %2393 = vmatpush3.bf16.msra.mxu1 %v2544_v40  ;;  %2372 = vmatprep.subr.bf16.mxu0 %v2545_v41 }
 0x303   :  { %2394 = vmatprep.subr.bf16.mxu1 %v2546_v42 }
 0x305   :  { %2373 = vmatpush3.bf16.msra.mxu0 %v2547_v43 }
 0x306   :  { %2395 = vmatpush3.bf16.msra.mxu1 %v2548_v44  ;;  %2374 = vmatprep.subr.bf16.mxu0 %v2549_v46 }
 0x307   :  { %2396 = vmatprep.subr.bf16.mxu1 %v2550_v28 }
 0x309   :  { %2375 = vmatpush3.bf16.msra.mxu0 %v2551_v48 }
 0x30a   :  { %2397 = vmatpush3.bf16.msra.mxu1 %v2552_v49  ;;  %2376 = vmatprep.subr.bf16.mxu0 %v2553_v50 }
 0x30b   :  { %2398 = vmatprep.subr.bf16.mxu1 %v2554_v31 }
 0x30d   :  { %2377 = vmatpush3.bf16.msra.mxu0 %v2555_v27 }
 0x30e   :  { %2399 = vmatpush3.bf16.msra.mxu1 %v2556_v32  ;;  %2378 = vmatprep.subr.bf16.mxu0 %v2557_v51 }
 0x30f   :  { %2400 = vmatprep.subr.bf16.mxu1 %v2558_v47 }
 0x311   :  { %2379 = vmatpush3.bf16.msra.mxu0 %v2559_v52 }
 0x312   :  { %2401 = vmatpush3.bf16.msra.mxu1 %v2560_v53  ;;  %2380 = vmatprep.subr.bf16.mxu0 %v2561_v54 }
 0x313   :  { %2402 = vmatprep.subr.bf16.mxu1 %v2562_v55 }
 0x315   :  { %2381 = vmatpush3.bf16.msra.mxu0 %v2563_v56 }
 0x316   :  { %2403 = vmatpush3.bf16.msra.mxu1 %v2564_v58  ;;  %2410 = vmatprep.subr.bf16.mxu0 %v2565_v29 }
 0x317   :  { %2432 = vmatprep.subr.bf16.mxu1 %v2566_v59 }
 0x318   :  { %2265 = vmatmul.mubr.msk.bf16.vlgmr.msra.gmra.mrb[12].mxu0 %vm2264_vm15, %v2627_v13 }
 0x319   :  { %2269 = vmatmul.mubr.msk.bf16.vlgmr.msra.gmra.mrb[12].mxu1 %vm2268_vm2, %v2627_v13  ;;  %2411 = vmatpush3.bf16.msra.mxu0 %v2567_v30 }
 0x31a   :  { %2271 = vmatprep.mubr.msk.bf16.mxu0 %vm2270_vm3, %v2627_v13  ;;  %2433 = vmatpush3.bf16.msra.mxu1 %v2568_v60 }
 0x31b   :  { %2275 = vmatprep.mubr.msk.bf16.mxu1 %vm2274_vm4, %v2627_v13  ;;  %2412 = vmatprep.subr.bf16.mxu0 %v2569_v33 }
 0x31c   :  { %2434 = vmatprep.subr.bf16.mxu1 %v2570_v61 }
 0x31d   :  { %2413 = vmatpush3.bf16.msra.mxu0 %v2571_v62 }
 0x31e   :  { %2435 = vmatpush3.bf16.msra.mxu1 %v2572_v63  ;;  %2414 = vmatprep.subr.bf16.mxu0 %v2573_v0 }
 0x31f   :  { %2436 = vmatprep.subr.bf16.mxu1 %v2574_v7 }
 0x321   :  { %2415 = vmatpush3.bf16.msra.mxu0 %v2575_v1 }
 0x322   :  { %2437 = vmatpush3.bf16.msra.mxu1 %v2576_v2  ;;  %2416 = vmatprep.subr.bf16.mxu0 %v2577_v3 }
 0x323   :  { %2438 = vmatprep.subr.bf16.mxu1 %v2578_v4 }
 0x325   :  { %2417 = vmatpush3.bf16.msra.mxu0 %v2579_v5 }
 0x326   :  { %2439 = vmatpush3.bf16.msra.mxu1 %v2580_v37  ;;  %2418 = vmatprep.subr.bf16.mxu0 %v2581_v6 }
 0x327   :  { %2440 = vmatprep.subr.bf16.mxu1 %v2582_v8 }
 0x329   :  { %2419 = vmatpush3.bf16.msra.mxu0 %v2583_v9 }
 0x32a   :  { %2441 = vmatpush3.bf16.msra.mxu1 %v2584_v45  ;;  %2420 = vmatprep.subr.bf16.mxu0 %v2585_v10 }
 0x32b   :  { %2442 = vmatprep.subr.bf16.mxu1 %v2586_v11 }
 0x32d   :  { %2421 = vmatpush3.bf16.msra.mxu0 %v2587_v12 }
 0x32e   :  { %2443 = vmatpush3.bf16.msra.mxu1 %v2588_v14  ;;  %2422 = vmatprep.subr.bf16.mxu0 %v2589_v15 }
 0x32f   :  { %2444 = vmatprep.subr.bf16.mxu1 %v2590_v16 }
 0x331   :  { %2423 = vmatpush3.bf16.msra.mxu0 %v2591_v17 }
 0x332   :  { %2445 = vmatpush3.bf16.msra.mxu1 %v2592_v18  ;;  %2424 = vmatprep.subr.bf16.mxu0 %v2593_v19 }
 0x333   :  { %2446 = vmatprep.subr.bf16.mxu1 %v2594_v20 }
 0x335   :  { %2425 = vmatpush3.bf16.msra.mxu0 %v2595_v21 }
 0x336   :  { %2447 = vmatpush3.bf16.msra.mxu1 %v2596_v22 }
 0x338   :  { %2273 = vmatmul.mubr.msk.bf16.vlgmr.msra.gmra.mrb[16].mxu0 %vm2272_vm10, %v2627_v13 }
 0x339   :  { %2277 = vmatmul.mubr.msk.bf16.vlgmr.msra.gmra.mrb[16].mxu1 %vm2276_vm11, %v2627_v13 }
 0x3ab   :  { %v2294_v23 = vpop.f32.mrb[4].mxu0 }
 0x3ac   :  { %v2316_v24 = vpop.f32.mrb[4].mxu1  ;;  %v2295_v26 = vpop.f32.mrb[5].mxu0 }
 0x3ad   :  { %v2296_v34 = vadd.f32 %v2295_v26, %v2294_v23  ;;  %v2317_v35 = vpop.f32.mrb[5].mxu1  ;;  %v2297_v36 = vpop.f32.mrb[6].mxu0 }
 0x3ae   :  { %v2318_v38 = vadd.f32 %v2317_v35, %v2316_v24  ;;  %v2319_v39 = vpop.f32.mrb[6].mxu1  ;;  %v2298_v57 = vpop.f32.mrb[7].mxu0 }
 0x3af   :  { %v1795_v40 = vadd.f32 %v2296_v34, %v2117_v25  ;;  %v2320_v41 = vpop.f32.mrb[7].mxu1 }
 0x3b1   :  { %v1835_v42 = vadd.f32 %v2318_v38, %v1795_v40 }
 0x3cb   :  { %v2338_v43 = vpop.f32.mrb[8].mxu0 }
 0x3cc   :  { %v2360_v44 = vpop.f32.mrb[8].mxu1  ;;  %v2339_v46 = vpop.f32.mrb[9].mxu0 }
 0x3cd   :  { %v2340_v13 = vadd.f32 %v2339_v46, %v2338_v43  ;;  %v2361_v28 = vpop.f32.mrb[9].mxu1  ;;  %v2341_v48 = vpop.f32.mrb[10].mxu0 }
 0x3ce   :  { %v2362_v49 = vadd.f32 %v2361_v28, %v2360_v44  ;;  %v2363_v50 = vpop.f32.mrb[10].mxu1  ;;  %v2342_v31 = vpop.f32.mrb[11].mxu0 }
 0x3cf   :  { %v1875_v27 = vadd.f32 %v2340_v13, %v1835_v42  ;;  %v2364_v32 = vpop.f32.mrb[11].mxu1 }
 0x3d1   :  { %v1915_v51 = vadd.f32 %v2362_v49, %v1875_v27 }
 0x3eb   :  { %v2382_v47 = vpop.f32.mrb[12].mxu0 }
 0x3ec   :  { %v2404_v52 = vpop.f32.mrb[12].mxu1  ;;  %v2383_v53 = vpop.f32.mrb[13].mxu0 }
 0x3ed   :  { %v2384_v54 = vadd.f32 %v2383_v53, %v2382_v47  ;;  %v2405_v55 = vpop.f32.mrb[13].mxu1  ;;  %v2385_v56 = vpop.f32.mrb[14].mxu0 }
 0x3ee   :  { %v2406_v58 = vadd.f32 %v2405_v55, %v2404_v52  ;;  %v2407_v29 = vpop.f32.mrb[14].mxu1  ;;  %v2386_v59 = vpop.f32.mrb[15].mxu0 }
 0x3ef   :  { %v1955_v30 = vadd.f32 %v2384_v54, %v1915_v51  ;;  %v2408_v60 = vpop.f32.mrb[15].mxu1 }
 0x3f1   :  { %v1995_v33 = vadd.f32 %v2406_v58, %v1955_v30 }
 0x40b   :  { %v2426_v61 = vpop.f32.mrb[16].mxu0 }
 0x40c   :  { %v2448_v62 = vpop.f32.mrb[16].mxu1  ;;  %v2427_v63 = vpop.f32.mrb[17].mxu0 }
 0x40d   :  { %v2428_v0 = vadd.f32 %v2427_v63, %v2426_v61  ;;  %v2449_v7 = vpop.f32.mrb[17].mxu1  ;;  %v2429_v1 = vpop.f32.mrb[18].mxu0 }
 0x40e   :  { %v2450_v2 = vadd.f32 %v2449_v7, %v2448_v62  ;;  %v2451_v3 = vpop.f32.mrb[18].mxu1  ;;  %v2430_v4 = vpop.f32.mrb[19].mxu0 }
 0x40f   :  { %v2035_v5 = vadd.f32 %v2428_v0, %v1995_v33  ;;  %v2452_v37 = vpop.f32.mrb[19].mxu1 }
 0x411   :  { %v2075_v6 = vadd.f32 %v2450_v2, %v2035_v5 }
 0x413   :  { %2080 = vst [vmem:[%s2885_s8] sm:$0x3f] %v2075_v6 }
 0x414   :  { %2089 = vsyncpa [#allocation3], 1 }

</bundles_post_ra>
